<compile_context>
chip_gen: v7x
topology: tpu7x:2x2x1
jax: 0.10.0
libtpu: 0.0.40
codegen_flags: <defaults>
</compile_context>

<pallas_src>
import functools

import jax
import jax.numpy as jnp
from jax.experimental import pallas as pl
from jax.experimental.pallas import tpu as pltpu


_LANE = 128      # lane width (last-dim alignment)
_SUBLANE = 8     # f32 sublane height (second-to-last-dim alignment)


def _round_up(n, m):
    return ((n + m - 1) // m) * m


def _fused_mlp_kernel(*refs, num_layers: int):
    """refs = (x_ref, w0_ref, b0_ref, ..., w{L-1}_ref, b{L-1}_ref, o_ref).

    Weights are pre-transposed to (in, out) and stored bf16; each layer is a
    bf16 MXU matmul with f32 accumulation, then f32 bias add (+ ReLU on all
    but the last layer) on the VPU.  Intermediate activations never leave
    VMEM/vregs for the whole kernel.
    """
    x_ref = refs[0]
    o_ref = refs[-1]
    h = x_ref[...]
    for l in range(num_layers):
        w_ref = refs[1 + 2 * l]
        b_ref = refs[2 + 2 * l]
        h = jnp.dot(h.astype(w_ref.dtype), w_ref[...],
                    preferred_element_type=jnp.float32)
        h = h + b_ref[...]
        if l < num_layers - 1:            # ReLU on all but the last layer
            h = jnp.maximum(h, 0.0)
    o_ref[...] = h.astype(o_ref.dtype)


def init_params(key, inner_layers):
    """PyTorch-Linear-style init (uniform +/- 1/sqrt(fan_in)).
    Weights stored PyTorch-style as (out_features, in_features)."""
    sizes = [28 * 28] + list(inner_layers) + [10]
    params = []
    for i in range(len(sizes) - 1):
        in_f, out_f = sizes[i], sizes[i + 1]
        key, kw, kb = jax.random.split(key, 3)
        bound = 1.0 / (in_f ** 0.5)
        w = jax.random.uniform(kw, (out_f, in_f), jnp.float32, -bound, bound)
        b = jax.random.uniform(kb, (out_f,), jnp.float32, -bound, bound)
        params.append((w, b))
    return params


def prepare_params(params):
    """One-time prep: pre-transpose to (in, out), zero-pad *output* dims to
    multiples of 128 (lane-dense), cast weights to bf16.

    The first layer's input dim stays at the true 784 (so x needs no feature
    re-pad); later layers' input dims are padded to match the previous
    layer's padded output.  Zero padding keeps results exact: padded units
    get 0 weight / 0 bias -> activation 0 -> contribute 0 downstream."""
    weights, biases = [], []
    for l, (w, b) in enumerate(params):
        out_f, in_f = w.shape
        in_p = in_f if l == 0 else _round_up(in_f, _LANE)
        out_p = _round_up(out_f, _LANE)
        wt = jnp.zeros((in_p, out_p), jnp.float32).at[:in_f, :out_f].set(w.T)
        weights.append(wt.astype(jnp.bfloat16))
        biases.append(jnp.zeros((1, out_p), jnp.float32).at[0, :out_f].set(b))
    return tuple(weights), tuple(biases)


def _pick_batch_tile(batch, target):
    """Sublane-aligned batch tile <= target.  Keep >= 2 grid steps when the
    batch can be split into >=128-row halves (feeds both v7x TensorCores via
    the "parallel" grid axis; an extra cheap step on single-TC v5e/v6e)."""
    b8 = _round_up(batch, _SUBLANE)
    bt = min(target, b8)
    if pl.cdiv(b8, bt) < 2 and b8 >= 2 * _LANE:
        bt = _round_up(pl.cdiv(b8, 2), _SUBLANE)
    return bt


@functools.partial(jax.jit, static_argnames=("out_features", "b_tile"))
def net_forward(x_nchw, weights, biases, *, out_features=10, b_tile=256):
    """Forward pass matching Net.forward: flatten, ReLU on all but last layer.
    Single fused pallas_call over a batch-tiled grid."""
    B = x_nchw.shape[0]
    x = x_nchw.reshape(B, -1)                  # torch.flatten(input, 1): free
    in_f = x.shape[1]
    num_layers = len(weights)
    out_pad_final = weights[-1].shape[1]

    bt = _pick_batch_tile(B, b_tile)
    B_pad = _round_up(B, bt)
    if B_pad != B:                             # pad batch only when needed
        x = jnp.pad(x, ((0, B_pad - B), (0, 0)))

    flat_args = [x]
    # x: K stays at the true 784 (block dim == full array dim is legal).
    in_specs = [pl.BlockSpec((bt, in_f), lambda i: (i, 0))]
    for w, b in zip(weights, biases):
        # Same block every grid step -> fetched once, stays VMEM-resident.
        in_specs.append(pl.BlockSpec(w.shape, lambda i: (0, 0)))
        in_specs.append(pl.BlockSpec(b.shape, lambda i: (0, 0)))
        flat_args += [w, b]

    flops = 2 * B_pad * sum(w.shape[0] * w.shape[1] for w in weights)
    bytes_accessed = (
        B_pad * in_f * x.dtype.itemsize
        + sum(w.size * w.dtype.itemsize for w in weights)
        + sum(b.size * b.dtype.itemsize for b in biases)
        + B_pad * out_pad_final * 4)

    kernel = functools.partial(_fused_mlp_kernel, num_layers=num_layers)
    out_padded = pl.pallas_call(
        kernel,
        out_shape=jax.ShapeDtypeStruct((B_pad, out_pad_final), jnp.float32),
        grid_spec=pltpu.PrefetchScalarGridSpec(
            num_scalar_prefetch=0,
            grid=(B_pad // bt,),
            in_specs=in_specs,
            out_specs=pl.BlockSpec((bt, out_pad_final), lambda i: (i, 0)),
        ),
        compiler_params=pltpu.CompilerParams(
            # Batch tiles are independent -> shard across TCs on v7x megacore.
            dimension_semantics=("parallel",),
        ),
        cost_estimate=pl.CostEstimate(
            flops=flops, transcendentals=0, bytes_accessed=bytes_accessed),
    )(*flat_args)

    # Strip batch padding and the lane padding of the logits.
    return out_padded[:B, :out_features]


def net_forward_ref(x_nchw, params):
    """Pure-JAX f32 reference for correctness checking (unpadded params)."""
    B = x_nchw.shape[0]
    out = x_nchw.reshape(B, -1)
    for w, b in params[:-1]:
        out = jnp.maximum(out @ w.T + b, 0.0)
    w, b = params[-1]
    return out @ w.T + b


if __name__ == "__main__":
    key = jax.random.PRNGKey(0)

    configs = [
        # (batch, inner_layers)
        (2, [32]),        # spec's small case: Linear(784,32)+ReLU, Linear(32,10)
        (2, []),          # no hidden layers: single Linear(784,10)
        (256, [64, 32]),  # multi-tile batch grid (2 tiles) + two hidden layers
    ]

    for batch, inner in configs:
        key, kx, kp = jax.random.split(key, 3)
        x = jax.random.normal(kx, (batch, 1, 28, 28), dtype=jnp.float32)
        params = init_params(kp, inner_layers=inner)
        weights, biases = prepare_params(params)

        out = jax.block_until_ready(net_forward(x, weights, biases))
        ref = net_forward_ref(x, params)

        assert out.shape == (batch, 10), (out.shape, batch, inner)
        # bf16 MXU inputs -> looser tolerance than a pure-f32 pipeline.
        max_diff = float(jnp.max(jnp.abs(out - ref)))
        assert jnp.allclose(out, ref, atol=5e-2, rtol=5e-2), (
            f"mismatch vs f32 reference for batch={batch}, inner={inner}: "
            f"max|diff|={max_diff}")

    print("KERNEL_OK")
</pallas_src>

<mosaic_0001>
module attributes {stable_mosaic.version = 11 : i64} {
  func.func @_fused_mlp_kernel(%arg0: i32, %arg1: memref<8x784xf32, #tpu.memory_space<vmem>>, %arg2: memref<784x128xbf16, #tpu.memory_space<vmem>>, %arg3: memref<1x128xf32, #tpu.memory_space<vmem>>, %arg4: memref<128x128xbf16, #tpu.memory_space<vmem>>, %arg5: memref<1x128xf32, #tpu.memory_space<vmem>>, %arg6: memref<8x128xf32, #tpu.memory_space<vmem>>) attributes {dimension_semantics = [#tpu.dimension_semantics<parallel>], iteration_bounds = array<i64: 1>, scalar_prefetch = 0 : i64, scratch_operands = 0 : i64, tpu.core_type = #tpu.core_type<tc>, window_params = [{transform_indices = @transform_0, window_bounds = array<i64: 8, 784>}, {pipeline_mode = #tpu.pipeline_mode<synchronous>, transform_indices = @transform_1, window_bounds = array<i64: 784, 128>}, {pipeline_mode = #tpu.pipeline_mode<synchronous>, transform_indices = @transform_2, window_bounds = array<i64: 1, 128>}, {pipeline_mode = #tpu.pipeline_mode<synchronous>, transform_indices = @transform_3, window_bounds = array<i64: 128, 128>}, {pipeline_mode = #tpu.pipeline_mode<synchronous>, transform_indices = @transform_4, window_bounds = array<i64: 1, 128>}, {transform_indices = @transform_5, window_bounds = array<i64: 8, 128>}]} {
    %c0 = arith.constant 0 : index
    %c0_0 = arith.constant 0 : index
    %0 = vector.load %arg1[%c0, %c0_0] : memref<8x784xf32, #tpu.memory_space<vmem>>, vector<8x784xf32>
    %1 = arith.truncf %0 : vector<8x784xf32> to vector<8x784xbf16>
    %c0_1 = arith.constant 0 : index
    %c0_2 = arith.constant 0 : index
    %2 = vector.load %arg2[%c0_1, %c0_2] : memref<784x128xbf16, #tpu.memory_space<vmem>>, vector<784x128xbf16>
    %cst = arith.constant dense<0.000000e+00> : vector<8x128xf32>
    %3 = tpu.matmul %1, %2, %cst {dimension_numbers = #tpu.dot_dimension_numbers<[1], [0], [0], [1], [0, 0, 1, 1], [], []>} : vector<8x784xbf16>, vector<784x128xbf16>, vector<8x128xf32> -> vector<8x128xf32>
    %c0_3 = arith.constant 0 : index
    %c0_4 = arith.constant 0 : index
    %4 = vector.load %arg3[%c0_3, %c0_4] : memref<1x128xf32, #tpu.memory_space<vmem>>, vector<1x128xf32>
    %5 = vector.broadcast %4 : vector<1x128xf32> to vector<8x128xf32>
    %6 = arith.addf %3, %5 : vector<8x128xf32>
    %cst_5 = arith.constant 0.000000e+00 : f32
    %7 = vector.broadcast %cst_5 : f32 to vector<8x128xf32>
    %8 = arith.maximumf %6, %7 : vector<8x128xf32>
    %9 = arith.truncf %8 : vector<8x128xf32> to vector<8x128xbf16>
    %c0_6 = arith.constant 0 : index
    %c0_7 = arith.constant 0 : index
    %10 = vector.load %arg4[%c0_6, %c0_7] : memref<128x128xbf16, #tpu.memory_space<vmem>>, vector<128x128xbf16>
    %cst_8 = arith.constant dense<0.000000e+00> : vector<8x128xf32>
    %11 = tpu.matmul %9, %10, %cst_8 {dimension_numbers = #tpu.dot_dimension_numbers<[1], [0], [0], [1], [0, 0, 1, 1], [], []>} : vector<8x128xbf16>, vector<128x128xbf16>, vector<8x128xf32> -> vector<8x128xf32>
    %c0_9 = arith.constant 0 : index
    %c0_10 = arith.constant 0 : index
    %12 = vector.load %arg5[%c0_9, %c0_10] : memref<1x128xf32, #tpu.memory_space<vmem>>, vector<1x128xf32>
    %13 = vector.broadcast %12 : vector<1x128xf32> to vector<8x128xf32>
    %14 = arith.addf %11, %13 : vector<8x128xf32>
    %c0_11 = arith.constant 0 : index
    %c0_12 = arith.constant 0 : index
    %15 = vector.load %arg6[%c0_11, %c0_12] : memref<8x128xf32, #tpu.memory_space<vmem>>, vector<8x128xf32>
    tpu.vector_store %arg6[%c0_11, %c0_12], %14 {strides = array<i32>} : memref<8x128xf32, #tpu.memory_space<vmem>>, vector<8x128xf32>,
    return
  }
  func.func @transform_0(%arg0: i32) -> (i32, i32) {
    %c0_i32 = arith.constant 0 : i32
    %c0_i32_0 = arith.constant 0 : i32
    return %arg0, %c0_i32 : i32, i32
  }
  func.func @transform_1(%arg0: i32) -> (i32, i32) {
    %c0_i32 = arith.constant 0 : i32
    %c0_i32_0 = arith.constant 0 : i32
    %c0_i32_1 = arith.constant 0 : i32
    return %c0_i32, %c0_i32_0 : i32, i32
  }
  func.func @transform_2(%arg0: i32) -> (i32, i32) {
    %c0_i32 = arith.constant 0 : i32
    %c0_i32_0 = arith.constant 0 : i32
    %c0_i32_1 = arith.constant 0 : i32
    return %c0_i32, %c0_i32_0 : i32, i32
  }
  func.func @transform_3(%arg0: i32) -> (i32, i32) {
    %c0_i32 = arith.constant 0 : i32
    %c0_i32_0 = arith.constant 0 : i32
    %c0_i32_1 = arith.constant 0 : i32
    return %c0_i32, %c0_i32_0 : i32, i32
  }
  func.func @transform_4(%arg0: i32) -> (i32, i32) {
    %c0_i32 = arith.constant 0 : i32
    %c0_i32_0 = arith.constant 0 : i32
    %c0_i32_1 = arith.constant 0 : i32
    return %c0_i32, %c0_i32_0 : i32, i32
  }
  func.func @transform_5(%arg0: i32) -> (i32, i32) {
    %c0_i32 = arith.constant 0 : i32
    %c0_i32_0 = arith.constant 0 : i32
    return %arg0, %c0_i32 : i32, i32
  }
}

</mosaic_0001>

<bundles_post_ra>
// kernel: net_forward.1
= control target key start
LH: loop header
LB: loop body
LE: loop exit
PB: predicated region body
PF: predicated region fallthrough
CT: control target
= control target key end

     0   :  { %10 = vsyncpa [#allocation3], 0  ;;  %s980_s18 = smov [#allocation2]   ;;  %s1094_s0 = inlined_call_operand.vmem [shape: f32[8,784], index: 0, kind: input, shape index: {}]   ;;  %s1095_s1 = inlined_call_operand.hbm [shape: bf16[784,128], index: 1, kind: input, shape index: {}]   ;;  %s1096_s2 = inlined_call_operand.vmem [shape: f32[1,128], index: 2, kind: input, shape index: {}]   ;;  %s1097_s3 = inlined_call_operand.vmem [shape: bf16[128,128], index: 3, kind: input, shape index: {}]   ;;  %s1098_s4 = inlined_call_operand.vmem [shape: f32[1,128], index: 4, kind: input, shape index: {}]   ;;  %s1099_s5 = inlined_call_operand.vmem [shape: f32[8,128], index: 5, kind: output, shape index: {}]  }
   0x1   :  { %s18_s19 = sshll.u32 %s980_s18, 4  ;;  %s956_s22 = scalar_lea.hbm %s1095_s1, 6272  ;;  %s19_s19 = int_to_ptr.vmem [resolvable:$true] %s18_s19 }
   0x2   :  { %p957_p0 = scmp.ne.s32.totalorder %s1095_s1, %s956_s22  ;;  %p960_p1 = scmp.lt.u32.totalorder %s956_s22, %s1095_s1 }
   0x4   :  { %p962_p2 = pnand %p960_p1, %p957_p0 }
   0x6   :  { %965 = shalt.err (!%p962_p2)
}
   0x7   :  { %s966_s27 = scalar_lea.vmem %s19_s19, 6272  ;;  %p971_p4 = scmp.lt.s32.totalorder %s19_s19, %s19_s19 }
   0x8   :  { %p967_p3 = scmp.ne.s32.totalorder %s19_s19, %s966_s27  ;;  %p972_p5 = scmp.lt.s32.totalorder %s966_s27, %s966_s27 }
   0xa   :  { %p973_p6 = por %p972_p5, %p971_p4 }
   0xc   :  { %p974_p7 = pnand %p973_p6, %p967_p3 }
   0xe   :  { %977 = shalt.err (!%p974_p7)
}
   0xf   :  { %s981_s28 = smov 64   ;;  %s982_s29 = smov 4  }
  0x10   :  { %24 = dma.hbm_to_vmem [thread:$0]  %s1095_s1, 6272, %s19_s19, [#allocation3], %s981_s28, %s981_s28, %s982_s29  }
  0x11   :  { %978 = dma.done.wait [#allocation3], 6272  }
  0x12   :  { %979 = vsyncadd [#allocation3], 4294961024  ;;  %v899_v0 = vld [vmem:[#allocation2 + $0x40] sm:$0xff]   ;;  %v903_v4 = vld [vmem:[#allocation2 + $0x48] sm:$0xff]   ;;  %v983_v44 = vmov 0.0   ;;  %vm984_vm0 = vmmov 0  }
  0x13   :  { %v900_v1 = vld [vmem:[#allocation2] sm:$0xff]   ;;  %791 = vmatprep.subr.bf16.mxu0 %v899_v0  ;;  %v904_v5 = vld [vmem:[#allocation2 + $0x8] sm:$0xff]   ;;  %v907_v8 = vld [vmem:[#allocation2 + $0x50] sm:$0xff]   ;;  %vm448_vm1 = vcmask 130048  }
  0x14   :  { %v901_v2 = vld [vmem:[#allocation2 + $0xc0] sm:$0xff]   ;;  %792 = vmatpush3.bf16.msra.mxu0 %v900_v1  ;;  %v905_v6 = vld [vmem:[#allocation2 + $0xc8] sm:$0xff]   ;;  %v908_v9 = vld [vmem:[#allocation2 + $0x10] sm:$0xff]  }
  0x15   :  { %v902_v3 = vld [vmem:[#allocation2 + $0x80] sm:$0xff]   ;;  %813 = vmatprep.subr.bf16.mxu1 %v901_v2  ;;  %793 = vmatprep.subr.bf16.mxu0 %v903_v4  ;;  %v906_v7 = vld [vmem:[#allocation2 + $0x88] sm:$0xff]   ;;  %v909_v10 = vld [vmem:[#allocation2 + $0xd0] sm:$0xff]  }
  0x16   :  { %814 = vmatpush3.bf16.msra.mxu1 %v902_v3  ;;  %v910_v11 = vld [vmem:[#allocation2 + $0x90] sm:$0xff]   ;;  %v911_v12 = vld [vmem:[#allocation2 + $0x58] sm:$0xff]   ;;  %v915_v16 = vld [vmem:[#allocation2 + $0x60] sm:$0xff]  }
  0x17   :  { %815 = vmatprep.subr.bf16.mxu1 %v905_v6  ;;  %v912_v13 = vld [vmem:[#allocation2 + $0x18] sm:$0xff]   ;;  %v916_v17 = vld [vmem:[#allocation2 + $0x20] sm:$0xff]   ;;  %v919_v20 = vld [vmem:[#allocation2 + $0x68] sm:$0xff]  }
  0x18   :  { %794 = vmatpush3.bf16.msra.mxu0 %v904_v5  ;;  %v913_v14 = vld [vmem:[#allocation2 + $0xd8] sm:$0xff]   ;;  %v917_v18 = vld [vmem:[#allocation2 + $0xe0] sm:$0xff]   ;;  %v920_v21 = vld [vmem:[#allocation2 + $0x28] sm:$0xff]  }
  0x19   :  { %795 = vmatprep.subr.bf16.mxu0 %v907_v8  ;;  %v914_v15 = vld [vmem:[#allocation2 + $0x98] sm:$0xff]   ;;  %v918_v19 = vld [vmem:[#allocation2 + $0xa0] sm:$0xff]   ;;  %v921_v22 = vld [vmem:[#allocation2 + $0xe8] sm:$0xff]  }
  0x1a   :  { %816 = vmatpush3.bf16.msra.mxu1 %v906_v7  ;;  %v922_v23 = vld [vmem:[#allocation2 + $0xa8] sm:$0xff]   ;;  %v923_v24 = vld [vmem:[#allocation2 + $0x70] sm:$0xff]   ;;  %v927_v28 = vld [vmem:[#allocation2 + $0x78] sm:$0xff]  }
  0x1b   :  { %817 = vmatprep.subr.bf16.mxu1 %v909_v10  ;;  %v924_v25 = vld [vmem:[#allocation2 + $0x30] sm:$0xff]   ;;  %v928_v29 = vld [vmem:[#allocation2 + $0x38] sm:$0xff]   ;;  %v36_v31 = vld [vmem:[%s1094_s0 + $0x8] sm:$0xff] }
  0x1c   :  { %796 = vmatpush3.bf16.msra.mxu0 %v908_v9  ;;  %v925_v26 = vld [vmem:[#allocation2 + $0xf0] sm:$0xff]   ;;  %v929_v30 = vld [vmem:[#allocation2 + $0xf8] sm:$0xff]   ;;  %v43_v32 = vpack.c.bf16 %v36_v31, %v36_v31  ;;  %v35_v34 = vld [vmem:[%s1094_s0] sm:$0xff] }
  0x1d   :  { %797 = vmatprep.subr.bf16.mxu0 %v911_v12  ;;  %v926_v27 = vld [vmem:[#allocation2 + $0xb0] sm:$0xff]   ;;  %v930_v33 = vld [vmem:[#allocation2 + $0xb8] sm:$0xff]   ;;  %v42_v35 = vpack.c.bf16 %v35_v34, %v35_v34  ;;  %v931_v36 = vld [vmem:[#allocation2 + $0x140] sm:$0xff]  }
  0x1e   :  { %818 = vmatpush3.bf16.msra.mxu1 %v910_v11  ;;  %v38_v37 = vld [vmem:[%s1094_s0 + $0x18] sm:$0xff]  ;;  %484 = vmatprep.mubr.bf16.mxu0 %v43_v32  ;;  %v932_v39 = vld [vmem:[#allocation2 + $0x100] sm:$0xff]   ;;  %v37_v40 = vld [vmem:[%s1094_s0 + $0x10] sm:$0xff] }
  0x1f   :  { %819 = vmatprep.subr.bf16.mxu1 %v913_v14  ;;  %v45_v38 = vpack.c.bf16 %v38_v37, %v38_v37  ;;  %v44_v41 = vpack.c.bf16 %v37_v40, %v37_v40  ;;  %v933_v42 = vld [vmem:[#allocation2 + $0x148] sm:$0xff]   ;;  %v935_v45 = vld [vmem:[#allocation2 + $0x150] sm:$0xff]   ;;  %v937_v47 = vld [vmem:[#allocation2 + $0x158] sm:$0xff]  }
  0x20   :  { %798 = vmatpush3.bf16.msra.mxu0 %v912_v13  ;;  %v934_v43 = vld [vmem:[#allocation2 + $0x108] sm:$0xff]   ;;  %v936_v46 = vld [vmem:[#allocation2 + $0x110] sm:$0xff]   ;;  %v938_v48 = vld [vmem:[#allocation2 + $0x118] sm:$0xff]  }
  0x21   :  { %799 = vmatprep.subr.bf16.mxu0 %v915_v16  ;;  %524 = vmatprep.mubr.bf16.mxu1 %v45_v38  ;;  %v939_v49 = vld [vmem:[#allocation2 + $0x160] sm:$0xff]   ;;  %v941_v51 = vld [vmem:[#allocation2 + $0x168] sm:$0xff]   ;;  %v943_v55 = vld [vmem:[#allocation2 + $0x170] sm:$0xff]  }
  0x22   :  { %820 = vmatpush3.bf16.msra.mxu1 %v914_v15  ;;  %v940_v50 = vld [vmem:[#allocation2 + $0x120] sm:$0xff]   ;;  %v942_v52 = vld [vmem:[#allocation2 + $0x128] sm:$0xff]   ;;  %v41_v57 = vld [vmem:[%s1094_s0 + $0x30] sm:$0xff] }
  0x23   :  { %821 = vmatprep.subr.bf16.mxu1 %v917_v18  ;;  %v947_v53 = vld [vmem:[#allocation2 + $0x180] sm:$0xff]   ;;  %v40_v54 = vld [vmem:[%s1094_s0 + $0x28] sm:$0xff]  ;;  %v48_v58 = vpack.c.bf16 %v41_v57, %v41_v57  ;;  %v944_v59 = vld [vmem:[#allocation2 + $0x130] sm:$0xff]  }
  0x24   :  { %800 = vmatpush3.bf16.msra.mxu0 %v916_v17  ;;  %v47_v56 = vpack.c.bf16 %v40_v54, %v40_v54  ;;  %v945_v60 = vld [vmem:[#allocation2 + $0x178] sm:$0xff]   ;;  %v39_v62 = vld [vmem:[%s1094_s0 + $0x20] sm:$0xff]  ;;  %v949_v1 = vld [vmem:[%s1097_s3 + $0x8] sm:$0xff]  }
  0x25   :  { %801 = vmatprep.subr.bf16.mxu0 %v919_v20  ;;  %v946_v61 = vld [vmem:[#allocation2 + $0x138] sm:$0xff]   ;;  %v46_v63 = vpack.c.bf16 %v39_v62, %v39_v62  ;;  %v948_v0 = vld [vmem:[%s1097_s3] sm:$0xff]   ;;  %v950_v2 = vld [vmem:[%s1097_s3 + $0x10] sm:$0xff]  }
  0x26   :  { %822 = vmatpush3.bf16.msra.mxu1 %v918_v19  ;;  %v951_v3 = vld [vmem:[%s1097_s3 + $0x18] sm:$0xff]   ;;  %v952_v4 = vld [vmem:[%s1097_s3 + $0x20] sm:$0xff]   ;;  %v953_v5 = vld [vmem:[%s1097_s3 + $0x28] sm:$0xff]  }
  0x27   :  { %823 = vmatprep.subr.bf16.mxu1 %v921_v22  ;;  %v954_v6 = vld [vmem:[%s1097_s3 + $0x30] sm:$0xff]   ;;  %v955_v7 = vld [vmem:[%s1097_s3 + $0x38] sm:$0xff]   ;;  %v731_v9 = vld [vmem:[%s1096_s2] ss:$0 sm:$0xff] }
  0x28   :  { %802 = vmatpush3.bf16.msra.mxu0 %v920_v21  ;;  %v782_v34 = vld [vmem:[%s1098_s4] ss:$0 sm:$0xff] }
  0x29   :  { %803 = vmatprep.subr.bf16.mxu0 %v923_v24 }
  0x2a   :  { %824 = vmatpush3.bf16.msra.mxu1 %v922_v23 }
  0x2b   :  { %825 = vmatprep.subr.bf16.mxu1 %v925_v26 }
  0x2c   :  { %804 = vmatpush3.bf16.msra.mxu0 %v924_v25 }
  0x2d   :  { %805 = vmatprep.subr.bf16.mxu0 %v927_v28 }
  0x2e   :  { %826 = vmatpush3.bf16.msra.mxu1 %v926_v27 }
  0x2f   :  { %827 = vmatprep.subr.bf16.mxu1 %v929_v30 }
  0x30   :  { %806 = vmatpush3.bf16.msra.mxu0 %v928_v29 }
  0x31   :  { %835 = vmatprep.subr.bf16.mxu0 %v931_v36 }
  0x32   :  { %828 = vmatpush3.bf16.msra.mxu1 %v930_v33 }
  0x33   :  { %485 = vmatmul.mubr.bf16.vlgmr.msra.gmra.mrb[0].mxu0 %v42_v35  ;;  %868 = vmatprep.subr.bf16.mxu1 %v983_v44 }
  0x34   :  { %836 = vmatpush3.bf16.msra.mxu0 %v932_v39  ;;  %564 = vmatprep.mubr.bf16.mxu0 %v47_v56 }
  0x35   :  { %525 = vmatmul.mubr.bf16.vlgmr.msra.gmra.mrb[0].mxu1 %v44_v41  ;;  %837 = vmatprep.subr.bf16.mxu0 %v933_v42 }
  0x36   :  { %870 = vmatprep.mubr.msk.bf16.mxu1 %vm984_vm0, %v983_v44  ;;  %869 = vmatpush3.bf16.msra.mxu1 %v947_v53 }
  0x37   :  { %874 = vmatprep.subr.bf16.mxu1 %v983_v44 }
  0x38   :  { %838 = vmatpush3.bf16.msra.mxu0 %v934_v43 }
  0x39   :  { %839 = vmatprep.subr.bf16.mxu0 %v935_v45 }
  0x3c   :  { %840 = vmatpush3.bf16.msra.mxu0 %v936_v46 }
  0x3d   :  { %841 = vmatprep.subr.bf16.mxu0 %v937_v47  ;;  %871 = vmatmul.mubr.msk.bf16.vlgmr.msra.gmra.mrb[4].mxu1 %vm448_vm1, %v48_v58 }
  0x3e   :  { %890 = vmatprep.mubr.msk.bf16.mxu1 %vm984_vm0, %v983_v44  ;;  %875 = vmatpush3.bf16.msra.mxu1 %v948_v0 }
  0x3f   :  { %876 = vmatprep.subr.bf16.mxu1 %v983_v44 }
  0x40   :  { %842 = vmatpush3.bf16.msra.mxu0 %v938_v48 }
  0x41   :  { %843 = vmatprep.subr.bf16.mxu0 %v939_v49 }
  0x42   :  { %877 = vmatpush3.bf16.msra.mxu1 %v949_v1 }
  0x43   :  { %878 = vmatprep.subr.bf16.mxu1 %v983_v44 }
  0x44   :  { %844 = vmatpush3.bf16.msra.mxu0 %v940_v50 }
  0x45   :  { %845 = vmatprep.subr.bf16.mxu0 %v941_v51 }
  0x46   :  { %879 = vmatpush3.bf16.msra.mxu1 %v950_v2 }
  0x47   :  { %880 = vmatprep.subr.bf16.mxu1 %v983_v44 }
  0x48   :  { %846 = vmatpush3.bf16.msra.mxu0 %v942_v52 }
  0x49   :  { %847 = vmatprep.subr.bf16.mxu0 %v943_v55 }
  0x4a   :  { %881 = vmatpush3.bf16.msra.mxu1 %v951_v3 }
  0x4b   :  { %882 = vmatprep.subr.bf16.mxu1 %v983_v44 }
  0x4c   :  { %848 = vmatpush3.bf16.msra.mxu0 %v944_v59 }
  0x4d   :  { %849 = vmatprep.subr.bf16.mxu0 %v945_v60 }
  0x4e   :  { %883 = vmatpush3.bf16.msra.mxu1 %v952_v4 }
  0x4f   :  { %884 = vmatprep.subr.bf16.mxu1 %v983_v44 }
  0x50   :  { %850 = vmatpush3.bf16.msra.mxu0 %v946_v61 }
  0x52   :  { %885 = vmatpush3.bf16.msra.mxu1 %v953_v5 }
  0x53   :  { %565 = vmatmul.mubr.bf16.vlgmr.msra.gmra.mrb[4].mxu0 %v46_v63  ;;  %886 = vmatprep.subr.bf16.mxu1 %v983_v44 }
  0x56   :  { %887 = vmatpush3.bf16.msra.mxu1 %v954_v6 }
  0x57   :  { %888 = vmatprep.subr.bf16.mxu1 %v983_v44 }
  0x5a   :  { %889 = vmatpush3.bf16.msra.mxu1 %v955_v7 }
 0x106   :  { %v807_v8 = vpop.f32.mrb[0].mxu0 }
 0x107   :  { %v808_v10 = vpop.f32.mrb[1].mxu0 }
 0x108   :  { %v809_v11 = vadd.f32 %v808_v10, %v807_v8  ;;  %v810_v12 = vpop.f32.mrb[2].mxu0  ;;  %v829_v13 = vpop.f32.mrb[0].mxu1 }
 0x109   :  { %v811_v14 = vpop.f32.mrb[3].mxu0  ;;  %v830_v16 = vpop.f32.mrb[1].mxu1 }
 0x10a   :  { %v487_v15 = vadd.f32 %v809_v11, %v731_v9  ;;  %v831_v17 = vadd.f32 %v830_v16, %v829_v13  ;;  %v832_v18 = vpop.f32.mrb[2].mxu1 }
 0x10b   :  { %v833_v19 = vpop.f32.mrb[3].mxu1 }
 0x10c   :  { %v527_v20 = vadd.f32 %v831_v17, %v487_v15 }
 0x110   :  { %v606_v21 = vpop.f32.mrb[4].mxu1 }
 0x111   :  { %v872_v22 = vpop.f32.mrb[5].mxu1 }
 0x112   :  { %v609_v23 = vpop.f32.mrb[6].mxu1 }
 0x113   :  { %v873_v24 = vpop.f32.mrb[7].mxu1 }
 0x126   :  { %v851_v25 = vpop.f32.mrb[4].mxu0 }
 0x127   :  { %v852_v26 = vpop.f32.mrb[5].mxu0 }
 0x128   :  { %v853_v27 = vadd.f32 %v852_v26, %v851_v25  ;;  %v854_v28 = vpop.f32.mrb[6].mxu0 }
 0x129   :  { %v855_v29 = vpop.f32.mrb[7].mxu0 }
 0x12a   :  { %v567_v30 = vadd.f32 %v853_v27, %v527_v20 }
 0x12c   :  { %v607_v31 = vadd.f32 %v606_v21, %v567_v30 }
 0x12e   :  { %v612_v32 = vmax.f32 %v607_v31, 0.0 }
 0x130   :  { %v613_v33 = vpack.c.bf16 %v612_v32, %v612_v32 }
 0x132   :  { %891 = vmatmul.mubr.bf16.vlgmr.msra.gmra.mrb[8].mxu1 %v613_v33 }
 0x205   :  { %v719_v35 = vpop.f32.mrb[8].mxu1 }
 0x206   :  { %v720_v36 = vadd.f32 %v782_v34, %v719_v35  ;;  %v892_v37 = vpop.f32.mrb[9].mxu1 }
 0x207   :  { %v722_v38 = vpop.f32.mrb[10].mxu1 }
 0x208   :  { %725 = vst [vmem:[%s1099_s5] sm:$0xff] %v720_v36  ;;  %v893_v39 = vpop.f32.mrb[11].mxu1 }
 0x209   :  { %730 = vsyncpa [#allocation3], 1 }

</bundles_post_ra>
